<compile_context>
chip_gen: v7x
topology: tpu7x:2x2x1
jax: 0.10.0
libtpu: 0.0.40
codegen_flags: <defaults>
</compile_context>

<pallas_src>
import functools

import jax
import jax.numpy as jnp
from jax.experimental import pallas as pl
from jax.experimental.pallas import tpu as pltpu


# ----------------------------- kernel ---------------------------------------


def _ipa2lt_kernel(x_ref, w1t_ref, b1_ref, wall_ref, out_ref, *,
                   apply_log: bool, second_mm_f32: bool):
    # In-kernel cast of the x tile (if the MXU operand dtype differs from the stored dtype).
    xv = x_ref[...]
    if xv.dtype != w1t_ref.dtype:
        xv = xv.astype(w1t_ref.dtype)

    # Basic network: logits = x @ W1^T + b1 ; h = softmax(logits).  Elementwise math in f32.
    logits = jnp.dot(xv, w1t_ref[...], preferred_element_type=jnp.float32) + b1_ref[...]
    m = jnp.max(logits, axis=-1, keepdims=True)
    e = jnp.exp(logits - m)
    # Exact reciprocal keeps tight agreement with the f32 reference (kernel is HBM-bound anyway).
    h = e * pl.reciprocal(jnp.sum(e, axis=-1, keepdims=True))

    # Fused per-annotator predictions: one lane-dense matmul over all annotators.
    wall = wall_ref[...]
    if second_mm_f32:
        if wall.dtype != jnp.float32:
            wall = wall.astype(jnp.float32)
        hv = h
    else:
        hv = h.astype(wall.dtype)
    pred = jnp.dot(hv, wall, preferred_element_type=jnp.float32)

    if apply_log:
        pred = jnp.maximum(jnp.log(jnp.maximum(pred, 1e-5)), -100.0)

    out_ref[...] = pred.astype(out_ref.dtype)


# ----------------------------- wrapper helpers ------------------------------


def _round_up(v, m):
    return ((v + m - 1) // m) * m


def _estimate_vmem_bytes(tb, E, L, n_pad, x_bytes, w_bytes, out_bytes):
    x_tiles = 2 * tb * E * x_bytes                      # double-buffered x tile
    out_tiles = 2 * tb * n_pad * out_bytes              # double-buffered output tile
    consts = 2 * (E * L * w_bytes + L * 4 + L * n_pad * w_bytes)   # grid-invariant operands
    temps = 3 * tb * n_pad * 4 + 2 * tb * L * 4         # rough Mosaic temporaries (logits/e/h/pred)
    return x_tiles + out_tiles + consts + temps


def _choose_batch_tile(B, block_b, E, L, n_pad, x_bytes, w_bytes, out_bytes,
                       min_steps=4, vmem_budget=40 * 1024 * 1024):
    if B <= 8:
        return B                                        # block == full dim (sublane rule satisfied)
    tb = max(8, min(block_b, (B // 8) * 8))             # sublane-aligned, <= B
    # Aim for >= min_steps grid steps so v7x's two TensorCores both get work and the
    # DMA pipeline has depth (harmless extra steps on 1-TC v5e/v6e).
    target = max(8, _round_up(pl.cdiv(B, min_steps), 8))
    tb = min(tb, target)
    # Shrink until the double-buffered working set fits a v7x-safe VMEM budget (64 MiB physical).
    while tb > 8 and _estimate_vmem_bytes(tb, E, L, n_pad, x_bytes, w_bytes, out_bytes) > vmem_budget:
        tb -= 8
    return tb


# ----------------------------- public entry point ---------------------------


def ipa2lt_head_forward(x, w1, b1, bias_mats, *, apply_log=False,
                        compute_dtype=jnp.float32, out_dtype=jnp.float32,
                        block_b=512, return_stacked=False):
    """x: (B, E); w1: (L, E) torch Linear weight; b1: (L,); bias_mats: (A, L, L)."""
    B, E = x.shape
    L = w1.shape[0]
    A = bias_mats.shape[0]

    # ---- hoisted weight prep (wrapper-side layout plumbing, negligible size) ----
    # Row-wise L1 normalize + abs, then concatenate all annotators along columns:
    #   W_all[:, a*L:(a+1)*L] == | W_a / ||W_a||_{L1, dim=1} |
    row_l1 = jnp.sum(jnp.abs(bias_mats), axis=2, keepdims=True)        # (A, L, 1)
    w_norm = jnp.abs(bias_mats / row_l1)                               # (A, L, L)
    w_all = jnp.transpose(w_norm, (1, 0, 2)).reshape(L, A * L)         # (L, A*L)

    # Pad fused output dim to a multiple of 128 -> unmasked lane-dense stores.
    n_out = A * L
    n_pad = int(_round_up(n_out, 128))
    if n_pad != n_out:
        w_all = jnp.pad(w_all, ((0, 0), (0, n_pad - n_out)))

    # Only the tiny grid-invariant operands are cast in the wrapper; x is NOT cast
    # (a standalone convert would be an extra full HBM pass over x).
    w1_t = jnp.transpose(w1).astype(compute_dtype)                     # (E, L)
    w_all = w_all.astype(compute_dtype)                                # (L, n_pad)
    b1_2d = b1.reshape(1, L).astype(jnp.float32)

    x_bytes = jnp.dtype(x.dtype).itemsize
    w_bytes = jnp.dtype(compute_dtype).itemsize
    out_bytes = jnp.dtype(out_dtype).itemsize

    tb = _choose_batch_tile(B, block_b, E, L, n_pad, x_bytes, w_bytes, out_bytes)
    grid = (int(pl.cdiv(B, tb)),)          # ragged last block handled by Pallas; no x padding

    est = _estimate_vmem_bytes(tb, E, L, n_pad, x_bytes, w_bytes, out_bytes)
    vmem_limit = int(min(64 * 1024 * 1024, max(32 * 1024 * 1024, 2 * est)))

    # bf16 path precision guard: keep h (probabilities) in f32 for the second matmul
    # whenever apply_log is requested (FLOPs are negligible; avoids log drift).
    second_mm_f32 = apply_log or (jnp.dtype(compute_dtype) == jnp.dtype(jnp.float32))

    kernel = functools.partial(_ipa2lt_kernel, apply_log=apply_log,
                               second_mm_f32=second_mm_f32)

    out = pl.pallas_call(
        kernel,
        out_shape=jax.ShapeDtypeStruct((B, n_pad), out_dtype),
        grid_spec=pltpu.PrefetchScalarGridSpec(
            num_scalar_prefetch=0,
            grid=grid,
            in_specs=[
                pl.BlockSpec((tb, E), lambda i: (i, 0)),       # x tile (varies per step)
                pl.BlockSpec((E, L), lambda i: (0, 0)),        # W1^T (grid-invariant)
                pl.BlockSpec((1, L), lambda i: (0, 0)),        # b1   (grid-invariant)
                pl.BlockSpec((L, n_pad), lambda i: (0, 0)),    # fused normalized bias matrices
            ],
            out_specs=pl.BlockSpec((tb, n_pad), lambda i: (i, 0)),
        ),
        compiler_params=pltpu.CompilerParams(
            dimension_semantics=("parallel",),
            vmem_limit_bytes=vmem_limit,
        ),
    )(x, w1_t, b1_2d, w_all)

    # One slice+reshape epilogue instead of A independent HBM slice passes.
    stacked = out[:, :n_out].reshape(B, A, L)
    if return_stacked:
        return stacked
    # PyTorch-compatible view: list of per-annotator predictions, each (B, L).
    return [stacked[:, a, :] for a in range(A)]


# ----------------------------- pure-JAX reference ----------------------------


def _reference(x, w1, b1, bias_mats, apply_log=False):
    logits = x @ w1.T + b1
    h = jax.nn.softmax(logits, axis=-1)
    outs = []
    for a in range(bias_mats.shape[0]):
        w = bias_mats[a]
        wn = jnp.abs(w / jnp.sum(jnp.abs(w), axis=1, keepdims=True))
        p = h @ wn
        if apply_log:
            p = jnp.maximum(jnp.log(jnp.maximum(p, 1e-5)), -100.0)
        outs.append(p)
    return outs


if __name__ == "__main__":
    # Small, deterministic synthetic setup.
    batch, embedding_dim, label_dim, annotator_dim = 8, 32, 8, 3

    key = jax.random.PRNGKey(0)
    kx, kw1, kb1, kbias, kx2 = jax.random.split(key, 5)

    x = jax.random.normal(kx, (batch, embedding_dim), dtype=jnp.float32)

    # BasicNetwork params (Linear(embedding_dim, label_dim)).
    w1 = jax.random.normal(kw1, (label_dim, embedding_dim), dtype=jnp.float32) * 0.1
    b1 = jax.random.normal(kb1, (label_dim,), dtype=jnp.float32) * 0.01

    # Bias matrices: near-identity + small deterministic noise (IPA2LT-style init).
    noise = jax.random.uniform(kbias, (annotator_dim, label_dim, label_dim),
                               dtype=jnp.float32, minval=0.0, maxval=0.1)
    bias_mats = jnp.eye(label_dim, dtype=jnp.float32)[None, :, :] + noise

    # 1) f32 path, single block.
    preds = ipa2lt_head_forward(x, w1, b1, bias_mats, apply_log=False)
    preds = [jax.block_until_ready(p) for p in preds]
    refs = _reference(x, w1, b1, bias_mats, apply_log=False)
    for p, r in zip(preds, refs):
        assert p.shape == (batch, label_dim)
        assert jnp.allclose(p, r, atol=1e-5, rtol=1e-5), "mismatch vs reference (f32)"

    # 2) apply_log path.
    preds_log = ipa2lt_head_forward(x, w1, b1, bias_mats, apply_log=True)
    preds_log = [jax.block_until_ready(p) for p in preds_log]
    refs_log = _reference(x, w1, b1, bias_mats, apply_log=True)
    for p, r in zip(preds_log, refs_log):
        assert jnp.allclose(p, r, atol=1e-5, rtol=1e-5), "mismatch vs reference (log)"

    # 3) Multi-step grid with ragged last block (no wrapper-side batch padding).
    b2 = 50
    x2 = jax.random.normal(kx2, (b2, embedding_dim), dtype=jnp.float32)
    preds2 = ipa2lt_head_forward(x2, w1, b1, bias_mats, apply_log=False, block_b=16)
    preds2 = [jax.block_until_ready(p) for p in preds2]
    refs2 = _reference(x2, w1, b1, bias_mats, apply_log=False)
    for p, r in zip(preds2, refs2):
        assert p.shape == (b2, label_dim)
        assert jnp.allclose(p, r, atol=1e-5, rtol=1e-5), "mismatch vs reference (ragged)"

    # 4) bf16 MXU-operand path (x cast in-kernel) + fused (B, A, L) output view.
    stacked_bf16 = ipa2lt_head_forward(x, w1, b1, bias_mats, apply_log=False,
                                       compute_dtype=jnp.bfloat16, return_stacked=True)
    stacked_bf16 = jax.block_until_ready(stacked_bf16)
    assert stacked_bf16.shape == (batch, annotator_dim, label_dim)
    for a in range(annotator_dim):
        assert jnp.allclose(stacked_bf16[:, a, :], refs[a],
                            atol=5e-2, rtol=5e-2), "mismatch vs reference (bf16)"

    print("KERNEL_OK")
</pallas_src>

<mosaic_0001>
module attributes {stable_mosaic.version = 11 : i64} {
  func.func @_ipa2lt_kernel(%arg0: i32, %arg1: memref<8x32xf32, #tpu.memory_space<vmem>>, %arg2: memref<32x8xf32, #tpu.memory_space<vmem>>, %arg3: memref<1x8xf32, #tpu.memory_space<vmem>>, %arg4: memref<8x128xf32, #tpu.memory_space<vmem>>, %arg5: memref<8x128xf32, #tpu.memory_space<vmem>>) attributes {dimension_semantics = [#tpu.dimension_semantics<parallel>], iteration_bounds = array<i64: 1>, scalar_prefetch = 0 : i64, scratch_operands = 0 : i64, tpu.core_type = #tpu.core_type<tc>, window_params = [{transform_indices = @transform_0, window_bounds = array<i64: 8, 32>}, {pipeline_mode = #tpu.pipeline_mode<synchronous>, transform_indices = @transform_1, window_bounds = array<i64: 32, 8>}, {pipeline_mode = #tpu.pipeline_mode<synchronous>, transform_indices = @transform_2, window_bounds = array<i64: 1, 8>}, {pipeline_mode = #tpu.pipeline_mode<synchronous>, transform_indices = @transform_3, window_bounds = array<i64: 8, 128>}, {transform_indices = @transform_4, window_bounds = array<i64: 8, 128>}]} {
    %c0 = arith.constant 0 : index
    %c0_0 = arith.constant 0 : index
    %0 = vector.load %arg1[%c0, %c0_0] : memref<8x32xf32, #tpu.memory_space<vmem>>, vector<8x32xf32>
    %c0_1 = arith.constant 0 : index
    %c0_2 = arith.constant 0 : index
    %1 = vector.load %arg2[%c0_1, %c0_2] : memref<32x8xf32, #tpu.memory_space<vmem>>, vector<32x8xf32>
    %cst = arith.constant dense<0.000000e+00> : vector<8x8xf32>
    %2 = tpu.matmul %0, %1, %cst {dimension_numbers = #tpu.dot_dimension_numbers<[1], [0], [0], [1], [0, 0, 1, 1], [], []>} : vector<8x32xf32>, vector<32x8xf32>, vector<8x8xf32> -> vector<8x8xf32>
    %c0_3 = arith.constant 0 : index
    %c0_4 = arith.constant 0 : index
    %3 = vector.load %arg3[%c0_3, %c0_4] : memref<1x8xf32, #tpu.memory_space<vmem>>, vector<1x8xf32>
    %4 = vector.broadcast %3 : vector<1x8xf32> to vector<8x8xf32>
    %5 = arith.addf %2, %4 : vector<8x8xf32>
    %cst_5 = arith.constant dense<0xFF800000> : vector<8xf32>
    %6 = vector.multi_reduction <maximumf>, %5, %cst_5 [1] : vector<8x8xf32> to vector<8xf32>
    %7 = vector.shape_cast %6 : vector<8xf32> to vector<8x1xf32>
    %8 = vector.broadcast %7 : vector<8x1xf32> to vector<8x8xf32>
    %9 = arith.subf %5, %8 : vector<8x8xf32>
    %10 = math.exp %9 : vector<8x8xf32>
    %cst_6 = arith.constant dense<0.000000e+00> : vector<8xf32>
    %11 = vector.multi_reduction <add>, %10, %cst_6 [1] : vector<8x8xf32> to vector<8xf32>
    %12 = vector.shape_cast %11 : vector<8xf32> to vector<8x1xf32>
    %13 = tpu.reciprocal %12 : vector<8x1xf32> -> vector<8x1xf32>
    %14 = vector.broadcast %13 : vector<8x1xf32> to vector<8x8xf32>
    %15 = arith.mulf %10, %14 : vector<8x8xf32>
    %c0_7 = arith.constant 0 : index
    %c0_8 = arith.constant 0 : index
    %16 = vector.load %arg4[%c0_7, %c0_8] : memref<8x128xf32, #tpu.memory_space<vmem>>, vector<8x128xf32>
    %cst_9 = arith.constant dense<0.000000e+00> : vector<8x128xf32>
    %17 = tpu.matmul %15, %16, %cst_9 {dimension_numbers = #tpu.dot_dimension_numbers<[1], [0], [0], [1], [0, 0, 1, 1], [], []>} : vector<8x8xf32>, vector<8x128xf32>, vector<8x128xf32> -> vector<8x128xf32>
    %c0_10 = arith.constant 0 : index
    %c0_11 = arith.constant 0 : index
    %18 = vector.load %arg5[%c0_10, %c0_11] : memref<8x128xf32, #tpu.memory_space<vmem>>, vector<8x128xf32>
    tpu.vector_store %arg5[%c0_10, %c0_11], %17 {strides = array<i32>} : memref<8x128xf32, #tpu.memory_space<vmem>>, vector<8x128xf32>,
    return
  }
  func.func @transform_0(%arg0: i32) -> (i32, i32) {
    %c0_i32 = arith.constant 0 : i32
    %c0_i32_0 = arith.constant 0 : i32
    return %arg0, %c0_i32 : i32, i32
  }
  func.func @transform_1(%arg0: i32) -> (i32, i32) {
    %c0_i32 = arith.constant 0 : i32
    %c0_i32_0 = arith.constant 0 : i32
    %c0_i32_1 = arith.constant 0 : i32
    return %c0_i32, %c0_i32_0 : i32, i32
  }
  func.func @transform_2(%arg0: i32) -> (i32, i32) {
    %c0_i32 = arith.constant 0 : i32
    %c0_i32_0 = arith.constant 0 : i32
    %c0_i32_1 = arith.constant 0 : i32
    return %c0_i32, %c0_i32_0 : i32, i32
  }
  func.func @transform_3(%arg0: i32) -> (i32, i32) {
    %c0_i32 = arith.constant 0 : i32
    %c0_i32_0 = arith.constant 0 : i32
    %c0_i32_1 = arith.constant 0 : i32
    return %c0_i32, %c0_i32_0 : i32, i32
  }
  func.func @transform_4(%arg0: i32) -> (i32, i32) {
    %c0_i32 = arith.constant 0 : i32
    %c0_i32_0 = arith.constant 0 : i32
    return %arg0, %c0_i32 : i32, i32
  }
}

</mosaic_0001>

<bundles_post_ra>
// kernel: tpu_custom_call.1
= control target key start
LH: loop header
LB: loop body
LE: loop exit
PB: predicated region body
PF: predicated region fallthrough
CT: control target
= control target key end

     0   :  { %v269_v3 = vmov 0.0|0.0   ;;  %vm270_vm0 = vmmov 0   ;;  %v271_v6 = vmov 0.0   ;;  %s334_s0 = inlined_call_operand.vmem [shape: f32[8,32], index: 0, kind: input, shape index: {}]   ;;  %s335_s1 = inlined_call_operand.vmem [shape: f32[32,8], index: 1, kind: input, shape index: {}]   ;;  %s336_s2 = inlined_call_operand.vmem [shape: f32[1,8], index: 2, kind: input, shape index: {}]   ;;  %s337_s3 = inlined_call_operand.vmem [shape: f32[8,128], index: 3, kind: input, shape index: {}]   ;;  %s338_s4 = inlined_call_operand.hbm [shape: f32[8,128], index: 4, kind: output, shape index: {}]  }
   0x1   :  { %v19_v0 = vld [vmem:[%s335_s1] sm:$0xff]  ;;  %v20_v1 = vld [vmem:[%s335_s1 + $0x8] sm:$0xff]  ;;  %v21_v2 = vld [vmem:[%s335_s1 + $0x10] sm:$0xff]  ;;  %231 = vmatprep.subr.bf16.mxu0 %v269_v3  ;;  %223 = vmatprep.mubr.msk.f32.mxu0 %vm270_vm0, %v271_v6 }
   0x2   :  { %v232_v4 = vpack.c.bf16 %v20_v1, %v19_v0  ;;  %v22_v5 = vld [vmem:[%s335_s1 + $0x18] sm:$0xff]  ;;  %226 = vmatprep.subr.mxu1 %v271_v6  ;;  %228 = vmatprep.mubr.msk.f32.mxu1 %vm270_vm0, %v271_v6 }
   0x3   :  { %9 = vsyncpa [#allocation3], 0  ;;  %v235_v7 = vpack.c.bf16 %v22_v5, %v21_v2  ;;  %v18_v8 = vld [vmem:[%s334_s0] sm:$0xff]  ;;  %vm30_vm1 = vcmask 261120   ;;  %vm104_vm2 = vcmask 64512  }
   0x4   :  { %233 = vmatpush3.bf16.msra.mxu0 %v232_v4  ;;  %v205_v9 = vld [vmem:[%s336_s2] ss:$0 sm:$0xff]  ;;  %s272_s2 = smov [#allocation2]  }
   0x5   :  { %234 = vmatprep.subr.bf16.mxu0 %v269_v3  ;;  %v116_v19 = vld [vmem:[%s337_s3] sm:$0xff]  ;;  %s197_s27 = sshll.u32 %s272_s2, 4  ;;  %s198_s27 = int_to_ptr.vmem [resolvable:$true] %s197_s27 }
   0x6   :  { %227 = vmatpush3.msra.mxu1 %v116_v19  ;;  %s245_s28 = scalar_lea.vmem %s198_s27, 128  ;;  %p250_p1 = scmp.lt.s32.totalorder %s198_s27, %s198_s27 }
   0x7   :  { %p246_p0 = scmp.ne.s32.totalorder %s198_s27, %s245_s28  ;;  %p251_p2 = scmp.lt.s32.totalorder %s245_s28, %s245_s28 }
   0x8   :  { %236 = vmatpush3.bf16.msra.mxu0 %v235_v7 }
   0x9   :  { %p252_p3 = por %p251_p2, %p250_p1 }
   0xb   :  { %224 = vmatmul.mubr.msk.f32.vlgmr.msra.gmra.mrb[0].mxu0 %vm30_vm1, %v18_v8  ;;  %p253_p4 = pnand %p252_p3, %p246_p0 }
  0xde   :  { %v100_v10 = vpop.f32.mrb[0].mxu0 }
  0xdf   :  { %v101_v11 = vadd.f32 %v205_v9, %v100_v10  ;;  %v225_v12 = vpop.f32.mrb[1].mxu0 }
  0xe1   :  { %v105_v13 = vsel %vm104_vm2, %v101_v11, -inf }
  0xe2   :  { %106 = vmax.xlane.f32.xlu0 %v105_v13 }
 0x16f   :  { %v107_v14 = vpop.xlane.xlu0 %106 }
 0x170   :  { %v108_v15 = vsub.f32 %v101_v11, %v107_v14 }
 0x172   :  { %v109_v16 = vmul.f32 1.442695, %v108_v15 }
 0x174   :  { %241 = vpow2.f32 %v109_v16 }
 0x17e   :  { %v242_v17 = vpop.eup %241 }
 0x17f   :  { %v111_v18 = vsel %vm104_vm2, %v242_v17, 0.0 }
 0x180   :  { %112 = vadd.xlane.f32.xlu0 %v111_v18 }
 0x20d   :  { %v113_v20 = vpop.xlane.xlu0 %112 }
 0x20e   :  { %243 = vrcp.f32 %v113_v20 }
 0x218   :  { %v244_v21 = vpop.eup %243 }
 0x219   :  { %v115_v22 = vmul.f32 %v244_v21, %v242_v17 }
 0x21b   :  { %229 = vmatmul.mubr.msk.f32.vlgmr.msra.gmra.mrb[0].mxu1 %vm104_vm2, %v115_v22 }
 0x2ee   :  { %v186_v23 = vpop.f32.mrb[0].mxu1 }
 0x2ef   :  { %190 = vst [vmem:[#allocation2] sm:$0xff] %v186_v23  ;;  %v230_v24 = vpop.f32.mrb[1].mxu1 }
 0x2f0   :  { %256 = shalt.err (!%p253_p4)
}
 0x2f1   :  { %s257_s30 = scalar_lea.hbm %s338_s4, 128 }
 0x2f2   :  { %p258_p5 = scmp.ne.s32.totalorder %s338_s4, %s257_s30  ;;  %p261_p6 = scmp.lt.u32.totalorder %s257_s30, %s338_s4 }
 0x2f4   :  { %p263_p7 = pnand %p261_p6, %p258_p5 }
 0x2f6   :  { %266 = shalt.err (!%p263_p7)
}
 0x2f7   :  { %200 = dma.vmem_to_hbm [thread:$0]  %s198_s27, 128, %s338_s4, [#allocation3]  }
 0x2f8   :  { %267 = dma.done.wait [#allocation3], 128  }
 0x2f9   :  { %268 = vsyncadd [#allocation3], 4294967168 }
 0x2fa   :  { %204 = vsyncpa [#allocation3], 1 }

</bundles_post_ra>
